<compile_context>
chip_gen: v5e
topology: v5e:2x2
jax: 0.10.0
libtpu: 0.0.40
codegen_flags: <defaults>
</compile_context>

<pallas_src>
import jax
import jax.numpy as jnp
from jax import lax
from jax.experimental import pallas as pl
from jax.experimental.pallas import tpu as pltpu


# --------------------------- problem sizes (small) ---------------------------
B = 2                      # batch
ACTION_SIZE = 4
FEATURE_SIZE = 32          # -> feature/2 = 16
HALF_FEAT = FEATURE_SIZE // 2
HIDDEN_SIZES = (32, 32)    # Mlp hidden sizes
RNN_H = 32                 # recurrent_hidden_size
OUT_SIZE = 8               # output_size
OBS_DIM = 32 * 10 * 10     # 3200 (fixed by the module: Linear(32*10*10, feature_size))
COMB = OUT_SIZE + RNN_H    # merged output width (head | new hidden)


# ------------------------------- Pallas kernel -------------------------------
def qnet_kernel(
    obs_ref,    # bf16 [B, 3200]
    act_ref,    # f32  [B, 4]
    hid_ref,    # f32  [B, 32]
    fw1t_ref,   # bf16 [32, 3200]   feature-net layer 1 weight, transposed (lane-dense)
    wmlp_ref,   # f32  [32, 96]     [fw2_pad | w0_feature_pad | mw1]
    w0a_ref,    # f32  [4, 32]      action rows of mlp fc0
    wgru_ref,   # f32  [64, 96]     rows 0:32 = W_ih (r|z|n), rows 32:64 = W_hh (r|z|n)
    whead_ref,  # f32  [32, 40]     [last_fc W | I_32]  (produces head and copies hnew)
    bias_ref,   # f32  [11, 40]     all biases / LN params, row-packed
    out_ref,    # f32  [B, 40]      [head(8) | new hidden(32)]
):
    f32 = jnp.float32

    def elu(x):
        # ELU(alpha=1); exp arg clamped (positive branch unused there).
        return jnp.where(x > 0, x, jnp.exp(jnp.minimum(x, 0.0)) - 1.0)

    def dot(a, b):
        return jnp.dot(a, b, preferred_element_type=f32)

    # ---- unpack bias block (all elementwise math stays f32) ----
    bias = bias_ref[...]            # [11, 40]
    b32 = bias[:, 0:RNN_H]          # [11, 32]
    fb1, fb2, mb0 = b32[0:1], b32[1:2], b32[2:3]
    lng, lnb, mb1 = b32[3:4], b32[4:5], b32[5:6]
    b_r, b_z, b_in, b_hn = b32[6:7], b32[7:8], b32[8:9], b32[9:10]
    b_head = bias[10:11, :]         # [1, 40]  (last_fc bias | zeros)

    # ---- feature_net layer 1: bf16 x bf16 -> f32, transposed-RHS contraction ----
    g = lax.dot_general(obs_ref[...], fw1t_ref[...],
                        dimension_numbers=(((1,), (1,)), ((), ())),
                        preferred_element_type=f32)           # [B, 32]
    g = elu(g + fb1)

    wmlp = wmlp_ref[...]                                       # [32, 96]

    # ---- feature_net layer 2 (width padded 16->32; padded W/b cols are zero, elu(0)=0) ----
    f = elu(dot(g, wmlp[:, 0:32]) + fb2)                       # [B, 32], cols 16:31 == 0
    # Dropout(p=0.5) in eval mode is the identity.
    # TODO(synk): training-mode dropout (random mask + 2x scale) not implemented.

    # ---- mlp fc0: concat(feature, action) @ W0 == f_pad @ W0f_pad + action @ W0a ----
    h = dot(f, wmlp[:, 32:64]) + dot(act_ref[...], w0a_ref[...]) + mb0

    # LayerNorm (biased variance, eps=1e-5) + ELU
    mu = jnp.mean(h, axis=-1, keepdims=True)
    var = jnp.mean((h - mu) ** 2, axis=-1, keepdims=True)
    h = (h - mu) * lax.rsqrt(var + 1e-5) * lng + lnb
    h = elu(h)

    # fc1 (last hidden layer -> no layernorm) + ELU
    h = elu(dot(h, wmlp[:, 64:96]) + mb1)

    # ---- single-step GRU, fused gate matmuls (PyTorch gate order r, z, n) ----
    wgru = wgru_ref[...]                                       # [64, 96]
    hx = hid_ref[...]
    gi = dot(h, wgru[0:RNN_H, :])                              # [B, 96]  h  @ W_ih
    gh = dot(hx, wgru[RNN_H:2 * RNN_H, :])                     # [B, 96]  hx @ W_hh
    r = jax.nn.sigmoid(gi[:, 0:32] + gh[:, 0:32] + b_r)        # b_r = b_ir + b_hr (pre-added)
    z = jax.nn.sigmoid(gi[:, 32:64] + gh[:, 32:64] + b_z)      # b_z = b_iz + b_hz (pre-added)
    n = jnp.tanh(gi[:, 64:96] + b_in + r * (gh[:, 64:96] + b_hn))
    hnew = (1.0 - z) * n + z * hx

    # ---- merged head: hnew @ [last_fc W | I] + [last_fc b | 0]  -> [head | hnew] ----
    out_ref[...] = dot(hnew, whead_ref[...]) + b_head


# ------------------------------ params + packing ------------------------------
def init_params(key):
    def u(key, shape, scale):
        return jax.random.uniform(key, shape, jnp.float32, -scale, scale)

    ks = jax.random.split(key, 24)
    p = {
        # feature net
        "fw1": u(ks[0], (OBS_DIM, FEATURE_SIZE), 0.02),
        "fb1": u(ks[1], (1, FEATURE_SIZE), 0.02),
        "fw2": u(ks[2], (FEATURE_SIZE, HALF_FEAT), 0.1),
        "fb2": u(ks[3], (1, HALF_FEAT), 0.1),
        # mlp fc0 split into feature-rows and action-rows (concat order = (feature, action))
        "mw0f": u(ks[4], (HALF_FEAT, HIDDEN_SIZES[0]), 0.1),
        "mw0a": u(ks[5], (ACTION_SIZE, HIDDEN_SIZES[0]), 0.1),
        "mb0": u(ks[6], (1, HIDDEN_SIZES[0]), 0.1),
        "lng": jnp.ones((1, HIDDEN_SIZES[0]), jnp.float32),
        "lnb": jnp.zeros((1, HIDDEN_SIZES[0]), jnp.float32),
        # mlp fc1
        "mw1": u(ks[7], (HIDDEN_SIZES[0], HIDDEN_SIZES[1]), 0.1),
        "mb1": u(ks[8], (1, HIDDEN_SIZES[1]), 0.1),
        # GRU, gate order (r, z, n); weights stored as [in, H]
        "wir": u(ks[9], (HIDDEN_SIZES[1], RNN_H), 0.1),
        "wiz": u(ks[10], (HIDDEN_SIZES[1], RNN_H), 0.1),
        "win": u(ks[11], (HIDDEN_SIZES[1], RNN_H), 0.1),
        "whr": u(ks[12], (RNN_H, RNN_H), 0.1),
        "whz": u(ks[13], (RNN_H, RNN_H), 0.1),
        "whn": u(ks[14], (RNN_H, RNN_H), 0.1),
        "bir": u(ks[15], (1, RNN_H), 0.1),
        "biz": u(ks[16], (1, RNN_H), 0.1),
        "bin": u(ks[17], (1, RNN_H), 0.1),
        "bhr": u(ks[18], (1, RNN_H), 0.1),
        "bhz": u(ks[19], (1, RNN_H), 0.1),
        "bhn": u(ks[20], (1, RNN_H), 0.1),
        # last_fc: uniform(-0.003, 0.003) as in the module
        "lw": u(ks[21], (RNN_H, OUT_SIZE), 0.003),
        "lb": u(ks[22], (1, OUT_SIZE), 0.003),
    }
    return p


def pack_params(p):
    """Pack the 24 small tensors into 6 lane-dense kernel inputs (done once)."""
    H = HIDDEN_SIZES[0]
    # width-pad layer-2 / fc0-feature weights to 32 with zero rows/cols (keeps math exact)
    fw2_pad = jnp.zeros((FEATURE_SIZE, H), jnp.float32).at[:, :HALF_FEAT].set(p["fw2"])
    w0f_pad = jnp.zeros((H, H), jnp.float32).at[:HALF_FEAT, :].set(p["mw0f"])
    w_mlp = jnp.concatenate([fw2_pad, w0f_pad, p["mw1"]], axis=1)            # [32, 96]

    w_ih = jnp.concatenate([p["wir"], p["wiz"], p["win"]], axis=1)           # [32, 96]
    w_hh = jnp.concatenate([p["whr"], p["whz"], p["whn"]], axis=1)           # [32, 96]
    w_gru = jnp.concatenate([w_ih, w_hh], axis=0)                            # [64, 96]

    # head matrix produces [last_fc(hnew) | hnew] in one matmul
    w_head = jnp.concatenate([p["lw"], jnp.eye(RNN_H, dtype=jnp.float32)], axis=1)  # [32, 40]

    def row(v):  # pad a [1, k] bias row to [1, COMB]
        r = jnp.zeros((1, COMB), jnp.float32)
        return r.at[:, : v.shape[1]].set(v)

    biases = jnp.concatenate([
        row(p["fb1"]), row(p["fb2"]), row(p["mb0"]),
        row(p["lng"]), row(p["lnb"]), row(p["mb1"]),
        row(p["bir"] + p["bhr"]),     # r-gate biases pre-added
        row(p["biz"] + p["bhz"]),     # z-gate biases pre-added
        row(p["bin"]), row(p["bhn"]), # n-gate biases kept separate (bhn sits inside r*(...))
        row(p["lb"]),                 # head bias (cols 8:40 zero -> hnew passes through)
    ], axis=0)                                                               # [11, 40]

    return {
        # big layer-1 weight: transposed (lane-dense, 3200 % 128 == 0) and bf16.
        # TODO(synk): optional int8 (v6e) / fp8 (v7x) quantization of fw1 not implemented.
        "fw1t": p["fw1"].T.astype(jnp.bfloat16),                             # [32, 3200]
        "w_mlp": w_mlp,
        "w0a": p["mw0a"],
        "w_gru": w_gru,
        "w_head": w_head,
        "biases": biases,
    }


# ---------------------------------- wrapper ----------------------------------
@jax.jit
def qnet_forward(obs_feature, action, hidden, kp):
    vmem = pl.BlockSpec(memory_space=pltpu.MemorySpace.VMEM)
    args = (
        obs_feature.astype(jnp.bfloat16),   # dominant input moved in bf16
        action, hidden,
        kp["fw1t"], kp["w_mlp"], kp["w0a"], kp["w_gru"], kp["w_head"], kp["biases"],
    )
    comb = pl.pallas_call(
        qnet_kernel,
        out_shape=jax.ShapeDtypeStruct((B, COMB), jnp.float32),
        in_specs=[vmem] * len(args),
        out_specs=vmem,
        cost_estimate=pl.CostEstimate(
            flops=460_000, transcendentals=600, bytes_accessed=270_000),
    )(*args)
    return comb[:, :OUT_SIZE], comb[:, OUT_SIZE:]


# ------------------------------ pure-JAX reference -----------------------------
def qnet_reference(obs, act, hid, p):
    elu = lambda x: jnp.where(x > 0, x, jnp.exp(jnp.minimum(x, 0.0)) - 1.0)
    # mirror the kernel's bf16 storage of the first layer (obs + fw1), f32 accumulate
    obs_q = obs.astype(jnp.bfloat16).astype(jnp.float32)
    fw1_q = p["fw1"].astype(jnp.bfloat16).astype(jnp.float32)
    f = elu(obs_q @ fw1_q + p["fb1"])
    f = elu(f @ p["fw2"] + p["fb2"])
    x = jnp.concatenate([f, act], axis=1)
    w0 = jnp.concatenate([p["mw0f"], p["mw0a"]], axis=0)
    h = x @ w0 + p["mb0"]
    mu = jnp.mean(h, axis=-1, keepdims=True)
    var = jnp.mean((h - mu) ** 2, axis=-1, keepdims=True)
    h = (h - mu) / jnp.sqrt(var + 1e-5) * p["lng"] + p["lnb"]
    h = elu(h)
    h = elu(h @ p["mw1"] + p["mb1"])
    hx = hid
    r = jax.nn.sigmoid(h @ p["wir"] + p["bir"] + hx @ p["whr"] + p["bhr"])
    z = jax.nn.sigmoid(h @ p["wiz"] + p["biz"] + hx @ p["whz"] + p["bhz"])
    n = jnp.tanh(h @ p["win"] + p["bin"] + r * (hx @ p["whn"] + p["bhn"]))
    hnew = (1.0 - z) * n + z * hx
    return hnew @ p["lw"] + p["lb"], hnew


# ------------------------------------ main ------------------------------------
if __name__ == "__main__":
    key = jax.random.PRNGKey(0)
    k_obs, k_act, k_hid, k_par = jax.random.split(key, 4)

    obs_feature = jax.random.normal(k_obs, (B, OBS_DIM), jnp.float32)
    action = jax.random.normal(k_act, (B, ACTION_SIZE), jnp.float32)
    hidden = jax.random.normal(k_hid, (B, RNN_H), jnp.float32)

    params = init_params(k_par)
    kparams = pack_params(params)

    out, hxs = qnet_forward(obs_feature, action, hidden, kparams)
    out, hxs = jax.block_until_ready((out, hxs))

    ref_out, ref_hxs = qnet_reference(obs_feature, action, hidden, params)
    assert out.shape == (B, OUT_SIZE) and hxs.shape == (B, RNN_H)
    assert jnp.allclose(out, ref_out, atol=1e-3, rtol=1e-3)
    assert jnp.allclose(hxs, ref_hxs, atol=1e-3, rtol=1e-3)

    print("KERNEL_OK")
</pallas_src>

<mosaic_0001>
module attributes {stable_mosaic.version = 11 : i64} {
  func.func @qnet_kernel(%arg0: memref<2x3200xbf16, #tpu.memory_space<vmem>>, %arg1: memref<2x4xf32, #tpu.memory_space<vmem>>, %arg2: memref<2x32xf32, #tpu.memory_space<vmem>>, %arg3: memref<32x3200xbf16, #tpu.memory_space<vmem>>, %arg4: memref<32x96xf32, #tpu.memory_space<vmem>>, %arg5: memref<4x32xf32, #tpu.memory_space<vmem>>, %arg6: memref<64x96xf32, #tpu.memory_space<vmem>>, %arg7: memref<32x40xf32, #tpu.memory_space<vmem>>, %arg8: memref<11x40xf32, #tpu.memory_space<vmem>>, %arg9: memref<2x40xf32, #tpu.memory_space<vmem>>) attributes {dimension_semantics = [], scalar_prefetch = 0 : i64, scratch_operands = 0 : i64, tpu.core_type = #tpu.core_type<tc>} {
    %c0 = arith.constant 0 : index
    %c0_0 = arith.constant 0 : index
    %0 = vector.load %arg8[%c0, %c0_0] : memref<11x40xf32, #tpu.memory_space<vmem>>, vector<11x40xf32>
    %1 = vector.extract_strided_slice %0 {offsets = [0, 0], sizes = [11, 32], strides = [1, 1]} : vector<11x40xf32> to vector<11x32xf32>
    %2 = vector.extract_strided_slice %1 {offsets = [0, 0], sizes = [1, 32], strides = [1, 1]} : vector<11x32xf32> to vector<1x32xf32>
    %3 = vector.extract_strided_slice %1 {offsets = [1, 0], sizes = [1, 32], strides = [1, 1]} : vector<11x32xf32> to vector<1x32xf32>
    %4 = vector.extract_strided_slice %1 {offsets = [2, 0], sizes = [1, 32], strides = [1, 1]} : vector<11x32xf32> to vector<1x32xf32>
    %5 = vector.extract_strided_slice %1 {offsets = [3, 0], sizes = [1, 32], strides = [1, 1]} : vector<11x32xf32> to vector<1x32xf32>
    %6 = vector.extract_strided_slice %1 {offsets = [4, 0], sizes = [1, 32], strides = [1, 1]} : vector<11x32xf32> to vector<1x32xf32>
    %7 = vector.extract_strided_slice %1 {offsets = [5, 0], sizes = [1, 32], strides = [1, 1]} : vector<11x32xf32> to vector<1x32xf32>
    %8 = vector.extract_strided_slice %1 {offsets = [6, 0], sizes = [1, 32], strides = [1, 1]} : vector<11x32xf32> to vector<1x32xf32>
    %9 = vector.extract_strided_slice %1 {offsets = [7, 0], sizes = [1, 32], strides = [1, 1]} : vector<11x32xf32> to vector<1x32xf32>
    %10 = vector.extract_strided_slice %1 {offsets = [8, 0], sizes = [1, 32], strides = [1, 1]} : vector<11x32xf32> to vector<1x32xf32>
    %11 = vector.extract_strided_slice %1 {offsets = [9, 0], sizes = [1, 32], strides = [1, 1]} : vector<11x32xf32> to vector<1x32xf32>
    %12 = vector.extract_strided_slice %0 {offsets = [10, 0], sizes = [1, 40], strides = [1, 1]} : vector<11x40xf32> to vector<1x40xf32>
    %c0_1 = arith.constant 0 : index
    %c0_2 = arith.constant 0 : index
    %13 = vector.load %arg0[%c0_1, %c0_2] : memref<2x3200xbf16, #tpu.memory_space<vmem>>, vector<2x3200xbf16>
    %c0_3 = arith.constant 0 : index
    %c0_4 = arith.constant 0 : index
    %14 = vector.load %arg3[%c0_3, %c0_4] : memref<32x3200xbf16, #tpu.memory_space<vmem>>, vector<32x3200xbf16>
    %cst = arith.constant dense<0.000000e+00> : vector<2x32xf32>
    %15 = tpu.matmul %13, %14, %cst {dimension_numbers = #tpu.dot_dimension_numbers<[1], [1], [0], [0], [0, 0, 1, 0], [], []>} : vector<2x3200xbf16>, vector<32x3200xbf16>, vector<2x32xf32> -> vector<2x32xf32>
    %16 = vector.broadcast %2 : vector<1x32xf32> to vector<2x32xf32>
    %17 = arith.addf %15, %16 : vector<2x32xf32>
    %cst_5 = arith.constant 0.000000e+00 : f32
    %18 = vector.broadcast %cst_5 : f32 to vector<2x32xf32>
    %19 = arith.cmpf ogt, %17, %18 : vector<2x32xf32>
    %cst_6 = arith.constant 0.000000e+00 : f32
    %20 = vector.broadcast %cst_6 : f32 to vector<2x32xf32>
    %21 = arith.minimumf %17, %20 : vector<2x32xf32>
    %22 = math.exp %21 : vector<2x32xf32>
    %cst_7 = arith.constant 1.000000e+00 : f32
    %23 = vector.broadcast %cst_7 : f32 to vector<2x32xf32>
    %24 = arith.subf %22, %23 : vector<2x32xf32>
    %25 = arith.select %19, %17, %24 : vector<2x32xi1>, vector<2x32xf32>
    %c0_8 = arith.constant 0 : index
    %c0_9 = arith.constant 0 : index
    %26 = vector.load %arg4[%c0_8, %c0_9] : memref<32x96xf32, #tpu.memory_space<vmem>>, vector<32x96xf32>
    %27 = vector.extract_strided_slice %26 {offsets = [0, 0], sizes = [32, 32], strides = [1, 1]} : vector<32x96xf32> to vector<32x32xf32>
    %cst_10 = arith.constant dense<0.000000e+00> : vector<2x32xf32>
    %28 = tpu.matmul %25, %27, %cst_10 {dimension_numbers = #tpu.dot_dimension_numbers<[1], [0], [0], [1], [0, 0, 1, 1], [], []>} : vector<2x32xf32>, vector<32x32xf32>, vector<2x32xf32> -> vector<2x32xf32>
    %29 = vector.broadcast %3 : vector<1x32xf32> to vector<2x32xf32>
    %30 = arith.addf %28, %29 : vector<2x32xf32>
    %cst_11 = arith.constant 0.000000e+00 : f32
    %31 = vector.broadcast %cst_11 : f32 to vector<2x32xf32>
    %32 = arith.cmpf ogt, %30, %31 : vector<2x32xf32>
    %cst_12 = arith.constant 0.000000e+00 : f32
    %33 = vector.broadcast %cst_12 : f32 to vector<2x32xf32>
    %34 = arith.minimumf %30, %33 : vector<2x32xf32>
    %35 = math.exp %34 : vector<2x32xf32>
    %cst_13 = arith.constant 1.000000e+00 : f32
    %36 = vector.broadcast %cst_13 : f32 to vector<2x32xf32>
    %37 = arith.subf %35, %36 : vector<2x32xf32>
    %38 = arith.select %32, %30, %37 : vector<2x32xi1>, vector<2x32xf32>
    %39 = vector.extract_strided_slice %26 {offsets = [0, 32], sizes = [32, 32], strides = [1, 1]} : vector<32x96xf32> to vector<32x32xf32>
    %cst_14 = arith.constant dense<0.000000e+00> : vector<2x32xf32>
    %40 = tpu.matmul %38, %39, %cst_14 {dimension_numbers = #tpu.dot_dimension_numbers<[1], [0], [0], [1], [0, 0, 1, 1], [], []>} : vector<2x32xf32>, vector<32x32xf32>, vector<2x32xf32> -> vector<2x32xf32>
    %c0_15 = arith.constant 0 : index
    %c0_16 = arith.constant 0 : index
    %41 = vector.load %arg1[%c0_15, %c0_16] : memref<2x4xf32, #tpu.memory_space<vmem>>, vector<2x4xf32>
    %c0_17 = arith.constant 0 : index
    %c0_18 = arith.constant 0 : index
    %42 = vector.load %arg5[%c0_17, %c0_18] : memref<4x32xf32, #tpu.memory_space<vmem>>, vector<4x32xf32>
    %cst_19 = arith.constant dense<0.000000e+00> : vector<2x32xf32>
    %43 = tpu.matmul %41, %42, %cst_19 {dimension_numbers = #tpu.dot_dimension_numbers<[1], [0], [0], [1], [0, 0, 1, 1], [], []>} : vector<2x4xf32>, vector<4x32xf32>, vector<2x32xf32> -> vector<2x32xf32>
    %44 = arith.addf %40, %43 : vector<2x32xf32>
    %45 = vector.broadcast %4 : vector<1x32xf32> to vector<2x32xf32>
    %46 = arith.addf %44, %45 : vector<2x32xf32>
    %cst_20 = arith.constant dense<0.000000e+00> : vector<2xf32>
    %47 = vector.multi_reduction <add>, %46, %cst_20 [1] : vector<2x32xf32> to vector<2xf32>
    %48 = vector.shape_cast %47 : vector<2xf32> to vector<2x1xf32>
    %cst_21 = arith.constant 3.200000e+01 : f32
    %49 = vector.broadcast %cst_21 : f32 to vector<2x1xf32>
    %50 = arith.divf %48, %49 : vector<2x1xf32>
    %51 = vector.broadcast %50 : vector<2x1xf32> to vector<2x32xf32>
    %52 = arith.subf %46, %51 : vector<2x32xf32>
    %53 = arith.mulf %52, %52 : vector<2x32xf32>
    %cst_22 = arith.constant dense<0.000000e+00> : vector<2xf32>
    %54 = vector.multi_reduction <add>, %53, %cst_22 [1] : vector<2x32xf32> to vector<2xf32>
    %55 = vector.shape_cast %54 : vector<2xf32> to vector<2x1xf32>
    %cst_23 = arith.constant 3.200000e+01 : f32
    %56 = vector.broadcast %cst_23 : f32 to vector<2x1xf32>
    %57 = arith.divf %55, %56 : vector<2x1xf32>
    %58 = vector.broadcast %50 : vector<2x1xf32> to vector<2x32xf32>
    %59 = arith.subf %46, %58 : vector<2x32xf32>
    %cst_24 = arith.constant 9.99999974E-6 : f32
    %60 = vector.broadcast %cst_24 : f32 to vector<2x1xf32>
    %61 = arith.addf %57, %60 : vector<2x1xf32>
    %62 = math.rsqrt %61 : vector<2x1xf32>
    %63 = vector.broadcast %62 : vector<2x1xf32> to vector<2x32xf32>
    %64 = arith.mulf %59, %63 : vector<2x32xf32>
    %65 = vector.broadcast %5 : vector<1x32xf32> to vector<2x32xf32>
    %66 = arith.mulf %64, %65 : vector<2x32xf32>
    %67 = vector.broadcast %6 : vector<1x32xf32> to vector<2x32xf32>
    %68 = arith.addf %66, %67 : vector<2x32xf32>
    %cst_25 = arith.constant 0.000000e+00 : f32
    %69 = vector.broadcast %cst_25 : f32 to vector<2x32xf32>
    %70 = arith.cmpf ogt, %68, %69 : vector<2x32xf32>
    %cst_26 = arith.constant 0.000000e+00 : f32
    %71 = vector.broadcast %cst_26 : f32 to vector<2x32xf32>
    %72 = arith.minimumf %68, %71 : vector<2x32xf32>
    %73 = math.exp %72 : vector<2x32xf32>
    %cst_27 = arith.constant 1.000000e+00 : f32
    %74 = vector.broadcast %cst_27 : f32 to vector<2x32xf32>
    %75 = arith.subf %73, %74 : vector<2x32xf32>
    %76 = arith.select %70, %68, %75 : vector<2x32xi1>, vector<2x32xf32>
    %77 = vector.extract_strided_slice %26 {offsets = [0, 64], sizes = [32, 32], strides = [1, 1]} : vector<32x96xf32> to vector<32x32xf32>
    %cst_28 = arith.constant dense<0.000000e+00> : vector<2x32xf32>
    %78 = tpu.matmul %76, %77, %cst_28 {dimension_numbers = #tpu.dot_dimension_numbers<[1], [0], [0], [1], [0, 0, 1, 1], [], []>} : vector<2x32xf32>, vector<32x32xf32>, vector<2x32xf32> -> vector<2x32xf32>
    %79 = vector.broadcast %7 : vector<1x32xf32> to vector<2x32xf32>
    %80 = arith.addf %78, %79 : vector<2x32xf32>
    %cst_29 = arith.constant 0.000000e+00 : f32
    %81 = vector.broadcast %cst_29 : f32 to vector<2x32xf32>
    %82 = arith.cmpf ogt, %80, %81 : vector<2x32xf32>
    %cst_30 = arith.constant 0.000000e+00 : f32
    %83 = vector.broadcast %cst_30 : f32 to vector<2x32xf32>
    %84 = arith.minimumf %80, %83 : vector<2x32xf32>
    %85 = math.exp %84 : vector<2x32xf32>
    %cst_31 = arith.constant 1.000000e+00 : f32
    %86 = vector.broadcast %cst_31 : f32 to vector<2x32xf32>
    %87 = arith.subf %85, %86 : vector<2x32xf32>
    %88 = arith.select %82, %80, %87 : vector<2x32xi1>, vector<2x32xf32>
    %c0_32 = arith.constant 0 : index
    %c0_33 = arith.constant 0 : index
    %89 = vector.load %arg6[%c0_32, %c0_33] : memref<64x96xf32, #tpu.memory_space<vmem>>, vector<64x96xf32>
    %c0_34 = arith.constant 0 : index
    %c0_35 = arith.constant 0 : index
    %90 = vector.load %arg2[%c0_34, %c0_35] : memref<2x32xf32, #tpu.memory_space<vmem>>, vector<2x32xf32>
    %91 = vector.extract_strided_slice %89 {offsets = [0, 0], sizes = [32, 96], strides = [1, 1]} : vector<64x96xf32> to vector<32x96xf32>
    %cst_36 = arith.constant dense<0.000000e+00> : vector<2x96xf32>
    %92 = tpu.matmul %88, %91, %cst_36 {dimension_numbers = #tpu.dot_dimension_numbers<[1], [0], [0], [1], [0, 0, 1, 1], [], []>} : vector<2x32xf32>, vector<32x96xf32>, vector<2x96xf32> -> vector<2x96xf32>
    %93 = vector.extract_strided_slice %89 {offsets = [32, 0], sizes = [32, 96], strides = [1, 1]} : vector<64x96xf32> to vector<32x96xf32>
    %cst_37 = arith.constant dense<0.000000e+00> : vector<2x96xf32>
    %94 = tpu.matmul %90, %93, %cst_37 {dimension_numbers = #tpu.dot_dimension_numbers<[1], [0], [0], [1], [0, 0, 1, 1], [], []>} : vector<2x32xf32>, vector<32x96xf32>, vector<2x96xf32> -> vector<2x96xf32>
    %95 = vector.extract_strided_slice %92 {offsets = [0, 0], sizes = [2, 32], strides = [1, 1]} : vector<2x96xf32> to vector<2x32xf32>
    %96 = vector.extract_strided_slice %94 {offsets = [0, 0], sizes = [2, 32], strides = [1, 1]} : vector<2x96xf32> to vector<2x32xf32>
    %97 = arith.addf %95, %96 : vector<2x32xf32>
    %98 = vector.broadcast %8 : vector<1x32xf32> to vector<2x32xf32>
    %99 = arith.addf %97, %98 : vector<2x32xf32>
    %100 = arith.negf %99 : vector<2x32xf32>
    %101 = math.exp %100 : vector<2x32xf32>
    %cst_38 = arith.constant 1.000000e+00 : f32
    %102 = vector.broadcast %cst_38 : f32 to vector<2x32xf32>
    %103 = arith.addf %102, %101 : vector<2x32xf32>
    %104 = arith.divf %102, %103 : vector<2x32xf32>
    %105 = vector.extract_strided_slice %92 {offsets = [0, 32], sizes = [2, 32], strides = [1, 1]} : vector<2x96xf32> to vector<2x32xf32>
    %106 = vector.extract_strided_slice %94 {offsets = [0, 32], sizes = [2, 32], strides = [1, 1]} : vector<2x96xf32> to vector<2x32xf32>
    %107 = arith.addf %105, %106 : vector<2x32xf32>
    %108 = vector.broadcast %9 : vector<1x32xf32> to vector<2x32xf32>
    %109 = arith.addf %107, %108 : vector<2x32xf32>
    %110 = arith.negf %109 : vector<2x32xf32>
    %111 = math.exp %110 : vector<2x32xf32>
    %cst_39 = arith.constant 1.000000e+00 : f32
    %112 = vector.broadcast %cst_39 : f32 to vector<2x32xf32>
    %113 = arith.addf %112, %111 : vector<2x32xf32>
    %114 = arith.divf %112, %113 : vector<2x32xf32>
    %115 = vector.extract_strided_slice %92 {offsets = [0, 64], sizes = [2, 32], strides = [1, 1]} : vector<2x96xf32> to vector<2x32xf32>
    %116 = vector.broadcast %10 : vector<1x32xf32> to vector<2x32xf32>
    %117 = arith.addf %115, %116 : vector<2x32xf32>
    %118 = vector.extract_strided_slice %94 {offsets = [0, 64], sizes = [2, 32], strides = [1, 1]} : vector<2x96xf32> to vector<2x32xf32>
    %119 = vector.broadcast %11 : vector<1x32xf32> to vector<2x32xf32>
    %120 = arith.addf %118, %119 : vector<2x32xf32>
    %121 = arith.mulf %104, %120 : vector<2x32xf32>
    %122 = arith.addf %117, %121 : vector<2x32xf32>
    %123 = math.tanh %122 : vector<2x32xf32>
    %cst_40 = arith.constant 1.000000e+00 : f32
    %124 = vector.broadcast %cst_40 : f32 to vector<2x32xf32>
    %125 = arith.subf %124, %114 : vector<2x32xf32>
    %126 = arith.mulf %125, %123 : vector<2x32xf32>
    %127 = arith.mulf %114, %90 : vector<2x32xf32>
    %128 = arith.addf %126, %127 : vector<2x32xf32>
    %c0_41 = arith.constant 0 : index
    %c0_42 = arith.constant 0 : index
    %129 = vector.load %arg7[%c0_41, %c0_42] : memref<32x40xf32, #tpu.memory_space<vmem>>, vector<32x40xf32>
    %cst_43 = arith.constant dense<0.000000e+00> : vector<2x40xf32>
    %130 = tpu.matmul %128, %129, %cst_43 {dimension_numbers = #tpu.dot_dimension_numbers<[1], [0], [0], [1], [0, 0, 1, 1], [], []>} : vector<2x32xf32>, vector<32x40xf32>, vector<2x40xf32> -> vector<2x40xf32>
    %131 = vector.broadcast %12 : vector<1x40xf32> to vector<2x40xf32>
    %132 = arith.addf %130, %131 : vector<2x40xf32>
    %c0_44 = arith.constant 0 : index
    %c0_45 = arith.constant 0 : index
    %133 = vector.load %arg9[%c0_44, %c0_45] : memref<2x40xf32, #tpu.memory_space<vmem>>, vector<2x40xf32>
    tpu.vector_store %arg9[%c0_44, %c0_45], %132 {strides = array<i32>} : memref<2x40xf32, #tpu.memory_space<vmem>>, vector<2x40xf32>,
    return
  }
}

</mosaic_0001>

<bundles_post_ra>
// kernel: qnet_forward.1
= control target key start
LH: loop header
LB: loop body
LE: loop exit
PB: predicated region body
PF: predicated region fallthrough
CT: control target
= control target key end

     0   :  { %14 = vsyncpa [#allocation3], 0  ;;  %s1836_s0 = inlined_call_operand.vmem [shape: bf16[2,3200], index: 0, kind: input, shape index: {}]   ;;  %s1837_s1 = inlined_call_operand.hbm [shape: f32[2,4], index: 1, kind: input, shape index: {}]   ;;  %s1838_s2 = inlined_call_operand.hbm [shape: f32[2,32], index: 2, kind: input, shape index: {}]   ;;  %s1839_s3 = inlined_call_operand.hbm [shape: bf16[32,3200], index: 3, kind: input, shape index: {}]   ;;  %s1840_s4 = inlined_call_operand.hbm [shape: f32[32,96], index: 4, kind: input, shape index: {}]   ;;  %s1841_s5 = inlined_call_operand.hbm [shape: f32[4,32], index: 5, kind: input, shape index: {}]   ;;  %s1842_s6 = inlined_call_operand.vmem [shape: f32[64,96], index: 6, kind: input, shape index: {}]   ;;  %s1843_s7 = inlined_call_operand.hbm [shape: f32[32,40], index: 7, kind: input, shape index: {}]   ;;  %s1844_s8 = inlined_call_operand.vmem [shape: f32[11,40], index: 8, kind: input, shape index: {}]   ;;  %s1845_s9 = inlined_call_operand.vmem [shape: f32[2,40], index: 9, kind: output, shape index: {}]  }
   0x1   :  { %15 = vsyncpa [#allocation5], 0 }
   0x2   :  { %16 = vsyncpa [#allocation8], 0  ;;  %s36_s11 = sshll.u32 %s1838_s2, 4  ;;  %s37_s11 = int_to_ptr.hbm [resolvable:$true] %s36_s11 }
   0x3   :  { %17 = vsyncpa [#allocation11], 0  ;;  %s1657_s12 = smov [#allocation4]   ;;  %s59_s16 = sshll.u32 %s1840_s4, 4  ;;  %s60_s16 = int_to_ptr.hbm [resolvable:$true] %s59_s16 }
   0x4   :  { %s38_s13 = sshll.u32 %s1657_s12, 4  ;;  %s1658_s17 = smov [#allocation7]   ;;  %s39_s13 = int_to_ptr.vmem [resolvable:$true] %s38_s13 }
   0x5   :  { %41 = dma.hbm_to_vmem [thread:$0]  %s37_s11, 32, %s39_s13, [#allocation5]  }
   0x6   :  { %s61_s18 = sshll.u32 %s1658_s17, 4  ;;  %s1659_s19 = smov 128   ;;  %s62_s18 = int_to_ptr.vmem [resolvable:$true] %s61_s18 }
   0x7   :  { %s1660_s20 = smov 8   ;;  %s25_s22 = sshll.u32 %s1837_s1, 4  ;;  %s26_s22 = int_to_ptr.hbm [resolvable:$true] %s25_s22 }
   0x8   :  { %67 = dma.hbm_to_vmem [thread:$0]  %s60_s16, 512, %s62_s18, [#allocation8], %s1659_s19, %s1659_s19, %s1660_s20  }
   0x9   :  { %s1661_s23 = smov [#allocation2]   ;;  %s46_s26 = sshll.u32 %s1839_s3, 4  ;;  %s47_s26 = int_to_ptr.hbm [resolvable:$true] %s46_s26 }
   0xa   :  { %s27_s24 = sshll.u32 %s1661_s23, 4  ;;  %s1662_s27 = smov [#allocation6]   ;;  %s28_s24 = int_to_ptr.vmem [resolvable:$true] %s27_s24 }
   0xb   :  { %30 = dma.hbm_to_vmem [thread:$0]  %s26_s22, 32, %s28_s24, [#allocation3]  }
   0xc   :  { %s48_s28 = sshll.u32 %s1662_s27, 4  ;;  %s1663_s29 = smov 1600   ;;  %s49_s28 = int_to_ptr.vmem [resolvable:$true] %s48_s28 }
   0xd   :  { %s1664_s30 = smov 100   ;;  %s73_s1 = sshll.u32 %s1841_s5, 4  ;;  %s74_s1 = int_to_ptr.hbm [resolvable:$true] %s73_s1 }
   0xe   :  { %54 = dma.hbm_to_vmem [thread:$0]  %s47_s26, 6400, %s49_s28, [#allocation5], %s1663_s29, %s1663_s29, %s1664_s30  }
   0xf   :  { %s1665_s12 = smov [#allocation9]   ;;  %s85_s3 = sshll.u32 %s1843_s7, 4  ;;  %s86_s3 = int_to_ptr.hbm [resolvable:$true] %s85_s3 }
  0x10   :  { %s75_s13 = sshll.u32 %s1665_s12, 4  ;;  %s1666_s16 = smov [#allocation10]   ;;  %s76_s13 = int_to_ptr.vmem [resolvable:$true] %s75_s13 }
  0x11   :  { %78 = dma.hbm_to_vmem [thread:$0]  %s74_s1, 64, %s76_s13, [#allocation8]  }
  0x12   :  { %s87_s17 = sshll.u32 %s1666_s16, 4  ;;  %s88_s17 = int_to_ptr.vmem [resolvable:$true] %s87_s17 }
  0x13   :  { %93 = dma.hbm_to_vmem [thread:$0]  %s86_s3, 512, %s88_s17, [#allocation11], %s1659_s19, %s1659_s19, %s1660_s20  }
  0x14   :  { %1649 = dma.done.wait [#allocation3], 32  }
  0x15   :  { %1650 = vsyncadd [#allocation3], 4294967264 }
  0x16   :  { %1651 = dma.done.wait [#allocation5], 6432  }
  0x17   :  { %1652 = vsyncadd [#allocation5], 4294960864 }
  0x18   :  { %1653 = dma.done.wait [#allocation8], 576  }
  0x19   :  { %1654 = vsyncadd [#allocation8], 4294966720 }
  0x1a   :  { %1655 = dma.done.wait [#allocation11], 512  }
  0x1b   :  { %1656 = vsyncadd [#allocation11], 4294966784  ;;  %v1287_v0 = vld [vmem:[#allocation6 + $0xc8] sm:$0xf]  ;;  %v1436_v1 = vld [vmem:[#allocation6 + $0x128] sm:$0xf0] }
  0x1c   :  { %v1295_v2 = vld [vmem:[#allocation6 + $0xd0] sm:$0xf]  ;;  %v1288_v3 = vor.u32 %v1436_v1, %v1287_v0  ;;  %v1437_v4 = vld [vmem:[#allocation6 + $0x130] sm:$0xf0]  ;;  %v1297_v6 = vld [vmem:[#allocation6 + $0x134] sm:$0xf0] }
  0x1d   :  { %v1425_v5 = vld [vmem:[#allocation6 + $0xd4] sm:$0xf]  ;;  %v1296_v7 = vor.u32 %v1437_v4, %v1295_v2  ;;  %v1424_v9 = vld [vmem:[#allocation6 + $0xcc] sm:$0xf]  ;;  %v1289_v10 = vld [vmem:[#allocation6 + $0x12c] sm:$0xf0] }
  0x1e   :  { %v1300_v8 = vor.u32 %v1425_v5, %v1297_v6  ;;  %v1187_v11 = vld [vmem:[#allocation6] sm:$0xf]  ;;  %496 = vmatpush.bf16.xpose.msra.mxu0 %v1288_v3  ;;  %v1292_v12 = vor.u32 %v1424_v9, %v1289_v10  ;;  %v1411_v13 = vld [vmem:[#allocation6 + $0x60] sm:$0xf0]  ;;  %v1195_v14 = vld [vmem:[#allocation6 + $0x8] sm:$0xf] }
  0x1f   :  { %v1412_v15 = vld [vmem:[#allocation6 + $0x68] sm:$0xf0]  ;;  %522 = vmatpush.bf16.xpose.msra.mxu2 %v1296_v7  ;;  %v1197_v17 = vld [vmem:[#allocation6 + $0x6c] sm:$0xf0]  ;;  %v1399_v18 = vld [vmem:[#allocation6 + $0x4] sm:$0xf]  ;;  %v1188_v24 = vor.u32 %v1411_v13, %v1187_v11 }
  0x20   :  { %535 = vmatpush.bf16.xpose.msra.mxu3 %v1300_v8  ;;  %v1400_v16 = vld [vmem:[#allocation6 + $0xc] sm:$0xf]  ;;  %509 = vmatpush.bf16.xpose.msra.mxu1 %v1292_v12  ;;  %v1189_v19 = vld [vmem:[#allocation6 + $0x64] sm:$0xf0]  ;;  %v123_v20 = vld [vmem:[%s1836_s0] sm:$0xff]  ;;  %v1196_v28 = vor.u32 %v1412_v15, %v1195_v14  ;;  %s1667_s24 = smov 96  }
  0x21   :  { %v1303_v21 = vld [vmem:[#allocation6 + $0xd8] sm:$0xf]  ;;  %181 = vst [vmem:[#allocation1] ss:$9 sm:$0xff] %v123_v20  ;;  %v1438_v22 = vld [vmem:[#allocation6 + $0x138] sm:$0xf0]  ;;  %v1200_v29 = vor.u32 %v1400_v16, %v1197_v17  ;;  %v1192_v32 = vor.u32 %v1399_v18, %v1189_v19 }
  0x22   :  { %v1311_v23 = vld [vmem:[#allocation6 + $0xe0] sm:$0xf]  ;;  %v1439_v25 = vld [vmem:[#allocation6 + $0x140] sm:$0xf0]  ;;  %v1313_v27 = vld [vmem:[#allocation6 + $0x144] sm:$0xf0]  ;;  %v1304_v33 = vor.u32 %v1438_v22, %v1303_v21 }
  0x23   :  { %v1427_v26 = vld [vmem:[#allocation6 + $0xe4] sm:$0xf]  ;;  %v1426_v30 = vld [vmem:[#allocation6 + $0xdc] sm:$0xf]  ;;  %v1305_v31 = vld [vmem:[#allocation6 + $0x13c] sm:$0xf0]  ;;  %v1312_v34 = vor.u32 %v1439_v25, %v1311_v23 }
  0x24   :  { %v1316_v35 = vor.u32 %v1427_v26, %v1313_v27  ;;  %v1308_v36 = vor.u32 %v1426_v30, %v1305_v31  ;;  %v1203_v37 = vld [vmem:[#allocation6 + $0x10] sm:$0xf]  ;;  %v1413_v38 = vld [vmem:[#allocation6 + $0x70] sm:$0xf0]  ;;  %v1211_v39 = vld [vmem:[#allocation6 + $0x18] sm:$0xf] }
  0x25   :  { %v1414_v40 = vld [vmem:[#allocation6 + $0x78] sm:$0xf0]  ;;  %v1213_v42 = vld [vmem:[#allocation6 + $0x7c] sm:$0xf0]  ;;  %v1401_v46 = vld [vmem:[#allocation6 + $0x14] sm:$0xf]  ;;  %v1204_v58 = vor.u32 %v1413_v38, %v1203_v37 }
  0x26   :  { %497 = vmatpush.bf16.xpose.msra.mxu0 %v1188_v24  ;;  %v1402_v41 = vld [vmem:[#allocation6 + $0x1c] sm:$0xf]  ;;  %v1205_v47 = vld [vmem:[#allocation6 + $0x74] sm:$0xf0]  ;;  %v1319_v48 = vld [vmem:[#allocation6 + $0xe8] sm:$0xf]  ;;  %v1212_v61 = vor.u32 %v1414_v40, %v1211_v39 }
  0x27   :  { %523 = vmatpush.bf16.xpose.msra.mxu2 %v1196_v28  ;;  %v1440_v49 = vld [vmem:[#allocation6 + $0x148] sm:$0xf0]  ;;  %v1327_v52 = vld [vmem:[#allocation6 + $0xf0] sm:$0xf]  ;;  %v1441_v53 = vld [vmem:[#allocation6 + $0x150] sm:$0xf0]  ;;  %v1216_v62 = vor.u32 %v1402_v41, %v1213_v42  ;;  %v1208_v1 = vor.u32 %v1401_v46, %v1205_v47 }
  0x28   :  { %536 = vmatpush.bf16.xpose.msra.mxu3 %v1200_v29  ;;  %510 = vmatpush.bf16.xpose.msra.mxu1 %v1192_v32  ;;  %v182_v43 = vld [vmem:[#allocation1] sm:$0xff]  ;;  %v184_v44 = vld [vmem:[#allocation1 + $0x12] sm:$0xff]  ;;  %v183_v50 = vld [vmem:[#allocation1 + $0x9] sm:$0xff]  ;;  %v1320_v2 = vor.u32 %v1440_v49, %v1319_v48  ;;  %v1328_v3 = vor.u32 %v1441_v53, %v1327_v52  ;;  %vm826_vm0 = vcmask 261120   ;;  %vm862_vm2 = vcmask 1043456   ;;  %s1669_s4 = smov 64  }
  0x29   :  { %v185_v45 = vld [vmem:[#allocation1 + $0x1b] sm:$0xff]  ;;  %v186_v51 = vld [vmem:[#allocation1 + $0x24] sm:$0xff]  ;;  %v187_v57 = vld [vmem:[#allocation1 + $0x2d] sm:$0xff]  ;;  %vm858_vm3 = vcmask 31744   ;;  %vm927_vm5 = vcmask 254976   ;;  %s1670_s7 = smov 32  }
  0x2a   :  { %v124_v54 = vld [vmem:[%s1836_s0 + $0x8] sm:$0xff]  ;;  %v188_v55 = vld [vmem:[#allocation1 + $0x36] sm:$0xff]  ;;  %v189_v56 = vld [vmem:[#allocation1 + $0x3f] sm:$0xff] }
  0x2b   :  { %v1429_v59 = vld [vmem:[#allocation6 + $0xf4] sm:$0xf]  ;;  %v1329_v60 = vld [vmem:[#allocation6 + $0x154] sm:$0xf0]  ;;  %191 = vst [vmem:[#allocation1] ss:$9 sm:$0xff] %v124_v54 }
  0x2c   :  { %v1428_v63 = vld [vmem:[#allocation6 + $0xec] sm:$0xf]  ;;  %v1321_v0 = vld [vmem:[#allocation6 + $0x14c] sm:$0xf0]  ;;  %v1332_v4 = vor.u32 %v1429_v59, %v1329_v60  ;;  %v1219_v6 = vld [vmem:[#allocation6 + $0x20] sm:$0xf] }
  0x2d   :  { %498 = vmatmul.bf16.vlgmr.msra.gmra.mxu0 %v182_v43  ;;  %v1324_v5 = vor.u32 %v1428_v63, %v1321_v0  ;;  %v1415_v7 = vld [vmem:[#allocation6 + $0x80] sm:$0xf0]  ;;  %v1227_v8 = vld [vmem:[#allocation6 + $0x28] sm:$0xf]  ;;  %v1416_v9 = vld [vmem:[#allocation6 + $0x88] sm:$0xf0] }
  0x2e   :  { %548 = vmatpush.bf16.xpose.msrb.mxu0 %v1304_v33  ;;  %524 = vmatmul.bf16.vlgmr.msra.gmra.mxu2 %v184_v44  ;;  %v1404_v10 = vld [vmem:[#allocation6 + $0x2c] sm:$0xf]  ;;  %v1229_v11 = vld [vmem:[#allocation6 + $0x8c] sm:$0xf0]  ;;  %v1403_v12 = vld [vmem:[#allocation6 + $0x24] sm:$0xf]  ;;  %v1220_v14 = vor.u32 %v1415_v7, %v1219_v6  ;;  %v1228_v15 = vor.u32 %v1416_v9, %v1227_v8 }
  0x2f   :  { %574 = vmatpush.bf16.xpose.msrb.mxu2 %v1312_v34  ;;  %537 = vmatmul.bf16.vlgmr.msra.gmra.mxu3 %v185_v45  ;;  %v1221_v13 = vld [vmem:[#allocation6 + $0x84] sm:$0xf0]  ;;  %v1232_v16 = vor.u32 %v1404_v10, %v1229_v11  ;;  %v1335_v18 = vld [vmem:[#allocation6 + $0xf8] sm:$0xf]  ;;  %v1442_v19 = vld [vmem:[#allocation6 + $0x158] sm:$0xf0] }
  0x30   :  { %587 = vmatpush.bf16.xpose.msrb.mxu3 %v1316_v35  ;;  %561 = vmatpush.bf16.xpose.msrb.mxu1 %v1308_v36  ;;  %v1224_v17 = vor.u32 %v1403_v12, %v1221_v13  ;;  %v1343_v20 = vld [vmem:[#allocation6 + $0x100] sm:$0xf]  ;;  %v1443_v21 = vld [vmem:[#allocation6 + $0x160] sm:$0xf0]  ;;  %v1345_v23 = vld [vmem:[#allocation6 + $0x164] sm:$0xf0]  ;;  %v1336_v26 = vor.u32 %v1442_v19, %v1335_v18 }
  0x31   :  { %511 = vmatmul.bf16.vlgmr.msra.gmra.mxu1 %v183_v50  ;;  %v1431_v22 = vld [vmem:[#allocation6 + $0x104] sm:$0xf]  ;;  %v1430_v24 = vld [vmem:[#allocation6 + $0xfc] sm:$0xf]  ;;  %v1337_v25 = vld [vmem:[#allocation6 + $0x15c] sm:$0xf0]  ;;  %v1344_v27 = vor.u32 %v1443_v21, %v1343_v20 }
  0x32   :  { %v1348_v28 = vor.u32 %v1431_v22, %v1345_v23  ;;  %v1340_v29 = vor.u32 %v1430_v24, %v1337_v25  ;;  %v1235_v30 = vld [vmem:[#allocation6 + $0x30] sm:$0xf]  ;;  %v1417_v31 = vld [vmem:[#allocation6 + $0x90] sm:$0xf0]  ;;  %v1243_v32 = vld [vmem:[#allocation6 + $0x38] sm:$0xf] }
  0x33   :  { %v1418_v33 = vld [vmem:[#allocation6 + $0x98] sm:$0xf0]  ;;  %v192_v34 = vld [vmem:[#allocation1] sm:$0xff]  ;;  %v194_v35 = vld [vmem:[#allocation1 + $0x12] sm:$0xff]  ;;  %v1236_v47 = vor.u32 %v1417_v31, %v1235_v30 }
  0x34   :  { %v195_v36 = vld [vmem:[#allocation1 + $0x1b] sm:$0xff]  ;;  %v193_v37 = vld [vmem:[#allocation1 + $0x9] sm:$0xff]  ;;  %v1237_v41 = vld [vmem:[#allocation6 + $0x94] sm:$0xf0]  ;;  %v1244_v48 = vor.u32 %v1418_v33, %v1243_v32 }
  0x35   :  { %v1406_v38 = vld [vmem:[#allocation6 + $0x3c] sm:$0xf]  ;;  %v1245_v39 = vld [vmem:[#allocation6 + $0x9c] sm:$0xf0]  ;;  %v1405_v40 = vld [vmem:[#allocation6 + $0x34] sm:$0xf] }
  0x36   :  { %549 = vmatpush.bf16.xpose.msrb.mxu0 %v1204_v58  ;;  %v196_v42 = vld [vmem:[#allocation1 + $0x24] sm:$0xff]  ;;  %v1751_v43 = vld [vmem:[#allocation1 + $0x36] sm:$0xff]  ;;  %v1755_v45 = vld [vmem:[#allocation1 + $0x2d] sm:$0xff]  ;;  %v1248_v49 = vor.u32 %v1406_v38, %v1245_v39  ;;  %v1240_v50 = vor.u32 %v1405_v40, %v1237_v41 }
  0x37   :  { %575 = vmatpush.bf16.xpose.msrb.mxu2 %v1212_v61  ;;  %v1753_v44 = vld [vmem:[#allocation1 + $0x3f] sm:$0xff]  ;;  %v125_v46 = vld [vmem:[%s1836_s0 + $0x10] sm:$0xff]  ;;  %v1444_v52 = vld [vmem:[#allocation6 + $0x168] sm:$0xf0] }
  0x38   :  { %588 = vmatpush.bf16.xpose.msrb.mxu3 %v1216_v62  ;;  %562 = vmatpush.bf16.xpose.msrb.mxu1 %v1208_v1  ;;  %201 = vst [vmem:[#allocation1] ss:$9 sm:$0xff] %v125_v46  ;;  %v1359_v53 = vld [vmem:[#allocation6 + $0x110] sm:$0xf]  ;;  %v1445_v54 = vld [vmem:[#allocation6 + $0x170] sm:$0xf0] }
  0x39   :  { %v1353_v58 = vld [vmem:[#allocation6 + $0x16c] sm:$0xf0]  ;;  %v1360_v60 = vor.u32 %v1445_v54, %v1359_v53  ;;  %v1251_v63 = vld [vmem:[#allocation6 + $0x40] sm:$0xf]  ;;  %v1419_v0 = vld [vmem:[#allocation6 + $0xa0] sm:$0xf0] }
  0x3a   :  { %v1259_v1 = vld [vmem:[#allocation6 + $0x48] sm:$0xf]  ;;  %v1252_v7 = vor.u32 %v1419_v0, %v1251_v63  ;;  %v1367_v11 = vld [vmem:[#allocation6 + $0x118] sm:$0xf]  ;;  %v1446_v12 = vld [vmem:[#allocation6 + $0x178] sm:$0xf0] }
  0x3b   :  { %v1253_v6 = vld [vmem:[#allocation6 + $0xa4] sm:$0xf0]  ;;  %v1375_v13 = vld [vmem:[#allocation6 + $0x120] sm:$0xf]  ;;  %v1368_v19 = vor.u32 %v1446_v12, %v1367_v11  ;;  %v126_v32 = vld [vmem:[%s1836_s0 + $0x18] sm:$0x1] }
  0x3c   :  { %v1369_v18 = vld [vmem:[#allocation6 + $0x17c] sm:$0xf0]  ;;  %v1421_v33 = vld [vmem:[#allocation6 + $0xb0] sm:$0xf0]  ;;  %v1269_v39 = vld [vmem:[#allocation6 + $0xb4] sm:$0xf0] }
  0x3d   :  { %550 = vmatmul.bf16.vlgmr.msrb.gmra.mxu0 %v186_v51  ;;  %v1351_v51 = vld [vmem:[#allocation6 + $0x108] sm:$0xf]  ;;  %v1409_v38 = vld [vmem:[#allocation6 + $0x54] sm:$0xf] }
  0x3e   :  { %600 = vmatpush.bf16.xpose.msra.mxu0 %v1320_v2  ;;  %576 = vmatmul.bf16.vlgmr.msrb.gmra.mxu2 %v188_v55  ;;  %v1433_v55 = vld [vmem:[#allocation6 + $0x114] sm:$0xf]  ;;  %v1352_v59 = vor.u32 %v1444_v52, %v1351_v51  ;;  %v1420_v2 = vld [vmem:[#allocation6 + $0xa8] sm:$0xf0] }
  0x3f   :  { %626 = vmatpush.bf16.xpose.msra.mxu2 %v1328_v3  ;;  %589 = vmatmul.bf16.vlgmr.msrb.gmra.mxu3 %v189_v56  ;;  %v1361_v56 = vld [vmem:[#allocation6 + $0x174] sm:$0xf0]  ;;  %v1408_v3 = vld [vmem:[#allocation6 + $0x4c] sm:$0xf]  ;;  %v1260_v8 = vor.u32 %v1420_v2, %v1259_v1  ;;  %v203_v25 = vld [vmem:[#allocation1 + $0x9] sm:$0xff] }
  0x40   :  { %639 = vmatpush.bf16.xpose.msra.mxu3 %v1332_v4  ;;  %613 = vmatpush.bf16.xpose.msra.mxu1 %v1324_v5  ;;  %v1364_v61 = vor.u32 %v1433_v55, %v1361_v56  ;;  %v1261_v4 = vld [vmem:[#allocation6 + $0xac] sm:$0xf0]  ;;  %v1407_v5 = vld [vmem:[#allocation6 + $0x44] sm:$0xf]  ;;  %v202_v22 = vld [vmem:[#allocation1] sm:$0xff] }
  0x41   :  { %563 = vmatmul.bf16.vlgmr.msrb.gmra.mxu1 %v187_v57  ;;  %v1432_v57 = vld [vmem:[#allocation6 + $0x10c] sm:$0xf]  ;;  %v1264_v9 = vor.u32 %v1408_v3, %v1261_v4  ;;  %v1256_v10 = vor.u32 %v1407_v5, %v1253_v6  ;;  %v209_v30 = vld [vmem:[#allocation1 + $0x3f] sm:$0xff]  ;;  %v207_v31 = vld [vmem:[#allocation1 + $0x2d] sm:$0xff] }
  0x42   :  { %v1356_v62 = vor.u32 %v1432_v57, %v1353_v58  ;;  %v204_v23 = vld [vmem:[#allocation1 + $0x12] sm:$0xff]  ;;  %v205_v24 = vld [vmem:[#allocation1 + $0x1b] sm:$0xff] }
  0x46   :  { %601 = vmatpush.bf16.xpose.msra.mxu0 %v1220_v14  ;;  %v1447_v14 = vld [vmem:[#allocation6 + $0x180] sm:$0xf0] }
  0x47   :  { %627 = vmatpush.bf16.xpose.msra.mxu2 %v1228_v15  ;;  %v1435_v15 = vld [vmem:[#allocation6 + $0x124] sm:$0xf]  ;;  %v1376_v20 = vor.u32 %v1447_v14, %v1375_v13 }
  0x48   :  { %640 = vmatpush.bf16.xpose.msra.mxu3 %v1232_v16  ;;  %614 = vmatpush.bf16.xpose.msra.mxu1 %v1224_v17  ;;  %v1377_v16 = vld [vmem:[#allocation6 + $0x184] sm:$0xf0]  ;;  %v1434_v17 = vld [vmem:[#allocation6 + $0x11c] sm:$0xf] }
  0x49   :  { %v1380_v21 = vor.u32 %v1435_v15, %v1377_v16 }
  0x4d   :  { %602 = vmatmul.bf16.vlgmr.msra.gmra.mxu0 %v192_v34  ;;  %v1275_v34 = vld [vmem:[#allocation6 + $0x58] sm:$0xf] }
  0x4e   :  { %652 = vmatpush.bf16.xpose.msrb.mxu0 %v1336_v26  ;;  %628 = vmatmul.bf16.vlgmr.msra.gmra.mxu2 %v194_v35  ;;  %v1372_v26 = vor.u32 %v1434_v17, %v1369_v18  ;;  %v1422_v35 = vld [vmem:[#allocation6 + $0xb8] sm:$0xf0] }
  0x4f   :  { %678 = vmatpush.bf16.xpose.msrb.mxu2 %v1344_v27  ;;  %641 = vmatmul.bf16.vlgmr.msra.gmra.mxu3 %v195_v36  ;;  %v1267_v27 = vld [vmem:[#allocation6 + $0x50] sm:$0xf]  ;;  %v1410_v36 = vld [vmem:[#allocation6 + $0x5c] sm:$0xf]  ;;  %v1276_v41 = vor.u32 %v1422_v35, %v1275_v34 }
  0x50   :  { %691 = vmatpush.bf16.xpose.msrb.mxu3 %v1348_v28  ;;  %665 = vmatpush.bf16.xpose.msrb.mxu1 %v1340_v29  ;;  %v206_v28 = vld [vmem:[#allocation1 + $0x24] sm:$0xff]  ;;  %v208_v29 = vld [vmem:[#allocation1 + $0x36] sm:$0xff]  ;;  %v1268_v40 = vor.u32 %v1421_v33, %v1267_v27 }
  0x51   :  { %615 = vmatmul.bf16.vlgmr.msra.gmra.mxu1 %v193_v37  ;;  %211 = vst [vmem:[#allocation1] ss:$9 sm:$0xff] %v126_v32  ;;  %v1277_v37 = vld [vmem:[#allocation6 + $0xbc] sm:$0xf0] }
  0x56   :  { %653 = vmatpush.bf16.xpose.msrb.mxu0 %v1236_v47  ;;  %v1283_v47 = vld [vmem:[#allocation6 + $0x60] sm:$0xf] }
  0x57   :  { %679 = vmatpush.bf16.xpose.msrb.mxu2 %v1244_v48  ;;  %v1423_v48 = vld [vmem:[#allocation6 + $0xc0] sm:$0xf0] }
  0x58   :  { %692 = vmatpush.bf16.xpose.msrb.mxu3 %v1248_v49  ;;  %666 = vmatpush.bf16.xpose.msrb.mxu1 %v1240_v50  ;;  %v1284_v49 = vor.u32 %v1423_v48, %v1283_v47  ;;  %v212_v50 = vld [vmem:[#allocation1] sm:$0xff] }
  0x59   :  { %v822_v47 = vld [vmem:[#allocation7 + $0x8] sm:$0xff] }
  0x5d   :  { %654 = vmatmul.bf16.vlgmr.msrb.gmra.mxu0 %v196_v42  ;;  %v1280_v42 = vor.u32 %v1410_v36, %v1277_v37 }
  0x5e   :  { %704 = vmatpush.bf16.xpose.msra.mxu0 %v1352_v59  ;;  %680 = vmatmul.bf16.vlgmr.msrb.gmra.mxu2 %v1751_v43  ;;  %v1272_v43 = vor.u32 %v1409_v38, %v1269_v39 }
  0x5f   :  { %730 = vmatpush.bf16.xpose.msra.mxu2 %v1360_v60  ;;  %693 = vmatmul.bf16.vlgmr.msrb.gmra.mxu3 %v1753_v44  ;;  %v1383_v44 = vld [vmem:[#allocation6 + $0x128] sm:$0xf]  ;;  %v1769_v60 = vld [vmem:[%s1844_s8] sm:$0xff] }
  0x60   :  { %743 = vmatpush.bf16.xpose.msra.mxu3 %v1364_v61  ;;  %717 = vmatpush.bf16.xpose.msra.mxu1 %v1356_v62  ;;  %v179_v62 = vperm.slane %v1769_v60, 0 }
  0x61   :  { %667 = vmatmul.bf16.vlgmr.msrb.gmra.mxu1 %v1755_v45  ;;  %v1448_v45 = vld [vmem:[#allocation6 + $0x188] sm:$0xf0] }
  0x62   :  { %v1384_v46 = vor.u32 %v1448_v45, %v1383_v44  ;;  %v824_v44 = vld [vmem:[#allocation7 + $0x18] sm:$0xff]  ;;  %v823_v45 = vld [vmem:[#allocation7 + $0x10] sm:$0xff] }
  0x66   :  { %705 = vmatpush.bf16.xpose.msra.mxu0 %v1252_v7 }
  0x67   :  { %731 = vmatpush.bf16.xpose.msra.mxu2 %v1260_v8 }
  0x68   :  { %744 = vmatpush.bf16.xpose.msra.mxu3 %v1264_v9  ;;  %718 = vmatpush.bf16.xpose.msra.mxu1 %v1256_v10 }
  0x6d   :  { %706 = vmatmul.bf16.vlgmr.msra.gmra.mxu0 %v202_v22 }
  0x6e   :  { %756 = vmatpush.bf16.xpose.msrb.mxu0 %v1368_v19  ;;  %732 = vmatmul.bf16.vlgmr.msra.gmra.mxu2 %v204_v23 }
  0x6f   :  { %782 = vmatpush.bf16.xpose.msrb.mxu2 %v1376_v20  ;;  %745 = vmatmul.bf16.vlgmr.msra.gmra.mxu3 %v205_v24 }
  0x70   :  { %795 = vmatpush.bf16.xpose.msrb.mxu3 %v1380_v21  ;;  %769 = vmatpush.bf16.xpose.msrb.mxu1 %v1372_v26 }
  0x71   :  { %719 = vmatmul.bf16.vlgmr.msra.gmra.mxu1 %v203_v25 }
  0x76   :  { %757 = vmatpush.bf16.xpose.msrb.mxu0 %v1268_v40 }
  0x77   :  { %783 = vmatpush.bf16.xpose.msrb.mxu2 %v1276_v41 }
  0x78   :  { %796 = vmatpush.bf16.xpose.msrb.mxu3 %v1280_v42  ;;  %770 = vmatpush.bf16.xpose.msrb.mxu1 %v1272_v43 }
  0x7d   :  { %758 = vmatmul.bf16.vlgmr.msrb.gmra.mxu0 %v206_v28 }
  0x7e   :  { %808 = vmatpush.bf16.xpose.msra.mxu0 %v1384_v46  ;;  %784 = vmatmul.bf16.vlgmr.msrb.gmra.mxu2 %v208_v29 }
  0x7f   :  { %797 = vmatmul.bf16.vlgmr.msrb.gmra.mxu3 %v209_v30 }
  0x80   :  { %842 = vmatpush.msra.mxu1 %v824_v44 }
  0x81   :  { %771 = vmatmul.bf16.vlgmr.msrb.gmra.mxu1 %v207_v31 }
  0x82   :  { %843 = vmatpush.msra.mxu1 %v823_v45 }
  0x84   :  { %844 = vmatpush.msra.mxu1 %v822_v47 }
  0x86   :  { %809 = vmatpush.bf16.xpose.msra.mxu0 %v1284_v49 }
  0x8d   :  { %810 = vmatmul.bf16.vlgmr.msra.gmra.mxu0 %v212_v50 }
  0xaa   :  { %v499_v51 = vpop.f32.mrf.mxu0 }
  0xab   :  { %v500_v2 = vadd.f32 %v499_v51, %v179_v62 }
  0xae   :  { %v512_v52 = vpop.f32.mrf.mxu1 }
  0xaf   :  { %v513_v4 = vadd.f32 %v512_v52, %v500_v2  ;;  %v821_v52 = vld [vmem:[#allocation7] sm:$0xff] }
  0xb0   :  { %845 = vmatpush.msra.mxu1 %v821_v52 }
  0xb1   :  { %v525_v53 = vpop.f32.mrf.mxu2 }
  0xb2   :  { %v538_v54 = vpop.f32.mrf.mxu3  ;;  %v501_v55 = vpop.f32.mrf.mxu0  ;;  %v526_v5 = vadd.f32 %v525_v53, %v513_v4  ;;  %v1772_v53 = vpack.i.bf16 %v823_v45, %v824_v44 }
  0xb4   :  { %v539_v10 = vadd.f32 %v538_v54, %v526_v5  ;;  %1464 = vrot.lane.b32.xlu0 %v1772_v53, %s1667_s24  ;;  %1474 = vrot.lane.b32.xlu2 %v1772_v53, %s1669_s4 }
  0xb6   :  { %v514_v56 = vpop.f32.mrf.mxu1 }
  0xb9   :  { %v527_v57 = vpop.f32.mrf.mxu2 }
  0xba   :  { %v540_v58 = vpop.f32.mrf.mxu3  ;;  %v551_v59 = vpop.f32.mrf.mxu0 }
  0xbb   :  { %v552_v11 = vadd.f32 %v551_v59, %v539_v10  ;;  %v1468_v59 = vpack.i.bf16 %v821_v52, %v822_v47 }
  0xbd   :  { %1469 = vrot.lane.b32.xlu0 %v1468_v59, %s1667_s24  ;;  %1479 = vrot.lane.b32.xlu2 %v1468_v59, %s1669_s4  ;;  %v1795_v59 = vld [vmem:[%s1844_s8 + $0x8] sm:$0x7] }
  0xbe   :  { %v564_v61 = vpop.f32.mrf.mxu1 }
  0xbf   :  { %v565_v15 = vadd.f32 %v564_v61, %v552_v11 }
  0xc1   :  { %v577_v63 = vpop.f32.mrf.mxu2 }
  0xc2   :  { %v590_v0 = vpop.f32.mrf.mxu3  ;;  %v553_v1 = vpop.f32.mrf.mxu0  ;;  %v578_v17 = vadd.f32 %v577_v63, %v565_v15 }
  0xc4   :  { %v591_v18 = vadd.f32 %v590_v0, %v578_v17 }
  0xc6   :  { %v566_v3 = vpop.f32.mrf.mxu1 }
  0xc9   :  { %v579_v6 = vpop.f32.mrf.mxu2 }
  0xca   :  { %v592_v7 = vpop.f32.mrf.mxu3  ;;  %v603_v8 = vpop.f32.mrf.mxu0 }
  0xcb   :  { %v604_v22 = vadd.f32 %v603_v8, %v591_v18  ;;  %v857_v18 = vld [vmem:[#allocation9] sm:$0xf] }
  0xcc   :  { %1388 = vmatpush.msk.msra.mxu2 %vm862_vm2, %v857_v18  ;;  %v1010_v18 = vld [vmem:[%s1842_s6 + $0x8] sm:$0xff] }
  0xce   :  { %v616_v9 = vpop.f32.mrf.mxu1 }
  0xcf   :  { %v617_v24 = vadd.f32 %v616_v9, %v604_v22 }
  0xd1   :  { %v629_v12 = vpop.f32.mrf.mxu2 }
  0xd2   :  { %v642_v13 = vpop.f32.mrf.mxu3  ;;  %v605_v14 = vpop.f32.mrf.mxu0  ;;  %v630_v25 = vadd.f32 %v629_v12, %v617_v24 }
  0xd4   :  { %v643_v30 = vadd.f32 %v642_v13, %v630_v25 }
  0xd6   :  { %v618_v16 = vpop.f32.mrf.mxu1 }
  0xd9   :  { %v631_v19 = vpop.f32.mrf.mxu2 }
  0xda   :  { %v644_v20 = vpop.f32.mrf.mxu3  ;;  %v655_v21 = vpop.f32.mrf.mxu0  ;;  %v856_v19 = vld [vmem:[#allocation2] sm:$0x3] }
  0xdb   :  { %v656_v31 = vadd.f32 %v655_v21, %v643_v30  ;;  %1389 = vmatmul.msk.f32.vlgmr.msra.gmra.mxu2 %vm858_vm3, %v856_v19  ;;  %v825_v20 = vperm.slane %v1769_v60, 1  ;;  %v1009_v19 = vld [vmem:[%s1842_s6] sm:$0xff] }
  0xde   :  { %v668_v23 = vpop.f32.mrf.mxu1 }
  0xdf   :  { %v669_v35 = vadd.f32 %v668_v23, %v656_v31 }
  0xe1   :  { %v681_v26 = vpop.f32.mrf.mxu2 }
  0xe2   :  { %v694_v27 = vpop.f32.mrf.mxu3  ;;  %v657_v28 = vpop.f32.mrf.mxu0  ;;  %v682_v37 = vadd.f32 %v681_v26, %v669_v35 }
  0xe4   :  { %v695_v38 = vadd.f32 %v694_v27, %v682_v37 }
  0xe6   :  { %v670_v29 = vpop.f32.mrf.mxu1 }
  0xe7   :  { %v925_v29 = vperm.slane %v1769_v60, 2 }
  0xe9   :  { %v683_v32 = vpop.f32.mrf.mxu2 }
  0xea   :  { %v696_v33 = vpop.f32.mrf.mxu3  ;;  %v707_v34 = vpop.f32.mrf.mxu0 }
  0xeb   :  { %v708_v42 = vadd.f32 %v707_v34, %v695_v38  ;;  %v1668_v34 = vmov 32.0  }
  0xee   :  { %v720_v36 = vpop.f32.mrf.mxu1 }
  0xef   :  { %v721_v46 = vadd.f32 %v720_v36, %v708_v42 }
  0xf1   :  { %v733_v39 = vpop.f32.mrf.mxu2 }
  0xf2   :  { %v746_v40 = vpop.f32.mrf.mxu3  ;;  %v709_v41 = vpop.f32.mrf.mxu0  ;;  %v734_v48 = vadd.f32 %v733_v39, %v721_v46 }
  0xf4   :  { %v747_v55 = vadd.f32 %v746_v40, %v734_v48 }
  0xf6   :  { %v722_v43 = vpop.f32.mrf.mxu1 }
  0xf9   :  { %v735_v49 = vpop.f32.mrf.mxu2 }
  0xfa   :  { %v748_v50 = vpop.f32.mrf.mxu3  ;;  %v759_v51 = vpop.f32.mrf.mxu0 }
  0xfb   :  { %v760_v56 = vadd.f32 %v759_v51, %v747_v55 }
  0xfe   :  { %v772_v54 = vpop.f32.mrf.mxu1 }
  0xff   :  { %v773_v62 = vadd.f32 %v772_v54, %v760_v56  ;;  %v1016_v56 = vld [vmem:[%s1842_s6 + $0x38] sm:$0xff] }
 0x101   :  { %v785_v57 = vpop.f32.mrf.mxu2 }
 0x102   :  { %v798_v58 = vpop.f32.mrf.mxu3  ;;  %v761_v61 = vpop.f32.mrf.mxu0  ;;  %v786_v0 = vadd.f32 %v785_v57, %v773_v62  ;;  %v1015_v57 = vld [vmem:[%s1842_s6 + $0x30] sm:$0xff]  ;;  %v1117_v62 = vperm.slane %v1795_v59, 1 }
 0x103   :  { %v1014_v61 = vld [vmem:[%s1842_s6 + $0x28] sm:$0xff] }
 0x104   :  { %v799_v1 = vadd.f32 %v798_v58, %v786_v0  ;;  %v1013_v0 = vld [vmem:[%s1842_s6 + $0x20] sm:$0xff]  ;;  %1119 = vrot.lane.b32.xlu0 %v1117_v62, %s1669_s4 }
 0x106   :  { %v774_v63 = vpop.f32.mrf.mxu1 }
 0x109   :  { %v787_v2 = vpop.f32.mrf.mxu2 }
 0x10a   :  { %v800_v3 = vpop.f32.mrf.mxu3  ;;  %v811_v4 = vpop.f32.mrf.mxu0  ;;  %v1017_v2 = vld [vmem:[#allocation4] sm:$0x3] }
 0x10b   :  { %v812_v5 = vadd.f32 %v811_v4, %v799_v1 }
 0x10d   :  { %v816_v6 = vmin.f32 %v812_v5, 0.0  ;;  %vm815_vm1 = vcmp.gt.f32.partialorder %v812_v5, 0.0 }
 0x10e   :  { %v1475_v46 = vpop.permute.xlu2 %1474 }
 0x10f   :  { %v817_v7 = vmul.f32 1.442695, %v816_v6  ;;  %v1477_v47 = vunpack.i.h.bf16 %v1475_v46  ;;  %v1476_v48 = vunpack.i.l.bf16 %v1475_v46 }
 0x111   :  { %1483 = vpow2.f32 %v817_v7  ;;  %995 = vmatpush.msrb.mxu1 %v1476_v48 }
 0x112   :  { %v813_v8 = vpop.f32.mrf.mxu0 }
 0x113   :  { %996 = vmatpush.msrb.mxu1 %v1477_v47  ;;  %v959_v8 = vperm.slane %v1769_v60, 4 }
 0x117   :  { %v1484_v9 = vpop.eup %1483  ;;  %v1480_v51 = vpop.permute.xlu2 %1479 }
 0x118   :  { %v1385_v10 = vadd.f32 -1.0, %v1484_v9  ;;  %v1482_v52 = vunpack.i.h.bf16 %v1480_v51  ;;  %v1481_v53 = vunpack.i.l.bf16 %v1480_v51 }
 0x11a   :  { %v820_v11 = vsel %vm815_vm1, %v812_v5, %v1385_v10  ;;  %997 = vmatpush.msrb.mxu1 %v1481_v53  ;;  %v957_v5 = vperm.slane %v1769_v60, 3 }
 0x11b   :  { %1386 = vmatmul.msk.f32.vlgmr.msra.gmra.mxu1 %vm826_vm0, %v820_v11 }
 0x11c   :  { %998 = vmatpush.msrb.mxu1 %v1482_v52 }
 0x126   :  { %v1465_v12 = vpop.permute.xlu0 %1464 }
 0x127   :  { %v1467_v13 = vunpack.i.h.bf16 %v1465_v12  ;;  %v1466_v14 = vunpack.i.l.bf16 %v1465_v12 }
 0x129   :  { %917 = vmatpush.msra.mxu3 %v1466_v14 }
 0x12b   :  { %918 = vmatpush.msra.mxu3 %v1467_v13 }
 0x12f   :  { %v1470_v15 = vpop.permute.xlu0 %1469 }
 0x130   :  { %v1471_v16 = vunpack.i.l.bf16 %v1470_v15  ;;  %v1472_v17 = vunpack.i.h.bf16 %v1470_v15 }
 0x132   :  { %919 = vmatpush.msra.mxu3 %v1471_v16  ;;  %v1012_v16 = vld [vmem:[%s1842_s6 + $0x18] sm:$0xff] }
 0x133   :  { %1033 = vmatpush.msrb.mxu2 %v1012_v16 }
 0x134   :  { %920 = vmatpush.msra.mxu3 %v1472_v17  ;;  %v1011_v17 = vld [vmem:[%s1842_s6 + $0x10] sm:$0xff] }
 0x135   :  { %1034 = vmatpush.msrb.mxu2 %v1011_v17 }
 0x136   :  { %1056 = vmatpush.msrb.mxu3 %v1016_v56 }
 0x137   :  { %1035 = vmatpush.msrb.mxu2 %v1010_v18 }
 0x138   :  { %1057 = vmatpush.msrb.mxu3 %v1015_v57 }
 0x139   :  { %1036 = vmatpush.msrb.mxu2 %v1009_v19 }
 0x13a   :  { %1058 = vmatpush.msrb.mxu3 %v1014_v61 }
 0x13c   :  { %1059 = vmatpush.msrb.mxu3 %v1013_v0  ;;  %v1147_v0 = vld [vmem:[#allocation10 + $0x10] sm:$0xff] }
 0x15e   :  { %v883_v28 = vpop.f32.mrf.mxu2 }
 0x198   :  { %v847_v21 = vpop.f32.mrf.mxu1 }
 0x199   :  { %v848_v22 = vadd.f32 %v847_v21, %v825_v20  ;;  %v1111_v20 = vperm.slane %v1795_v59, 0  ;;  %v1120_v21 = vpop.permute.xlu0 %1119 }
 0x19b   :  { %v851_v23 = vmin.f32 %v848_v22, 0.0  ;;  %vm850_vm4 = vcmp.gt.f32.partialorder %v848_v22, 0.0  ;;  %1113 = vrot.lane.b32.xlu2 %v1111_v20, %s1669_s4  ;;  %v1149_v20 = vperm.slane %v1795_v59, 2 }
 0x19d   :  { %v852_v24 = vmul.f32 1.442695, %v851_v23 }
 0x19f   :  { %1485 = vpow2.f32 %v852_v24  ;;  %v1086_v24 = vperm.slane %v1769_v60, 7 }
 0x1a0   :  { %1487 = vrcp.f32 %v1668_v34 }
 0x1a3   :  { %1088 = vrot.lane.b32.xlu2 %v1086_v24, %s1670_s7 }
 0x1a5   :  { %v1486_v25 = vpop.eup %1485 }
 0x1a6   :  { %v1387_v26 = vadd.f32 -1.0, %v1486_v25  ;;  %v1488_v35 = vpop.eup %1487  ;;  %v967_v25 = vperm.slane %v1769_v60, 5 }
 0x1a7   :  { %v932_v36 = vmul.f32 32.0, %v1488_v35  ;;  %vm936_vm6 = vweird.f32 %v1488_v35 }
 0x1a8   :  { %v855_v27 = vsel %vm850_vm4, %v848_v22, %v1387_v26 }
 0x1a9   :  { %1390 = vmatmul.msk.f32.vlgmr.msra.gmra.mxu3 %vm826_vm0, %v855_v27  ;;  %v933_v37 = vsub.f32 1.0, %v932_v36 }
 0x1ab   :  { %v934_v38 = vmul.f32 %v1488_v35, %v933_v37  ;;  %1140 = vrot.lane.b32.xlu2 %v1017_v2, %s1670_s7 }
 0x1ad   :  { %v935_v39 = vadd.f32 %v1488_v35, %v934_v38 }
 0x1af   :  { %v937_v40 = vsel %vm936_vm6, %v1488_v35, %v935_v39 }
 0x1b1   :  { %1395 = vmatmul.msk.f32.vlgmr.msrb.gmra.mxu3 %vm826_vm0, %v1017_v2  ;;  %v1146_v2 = vld [vmem:[#allocation10 + $0x8] sm:$0xff] }
 0x1f5   :  { %v1114_v51 = vpop.permute.xlu2 %1113 }
 0x1fd   :  { %v1089_v56 = vpop.permute.xlu2 %1088 }
 0x22c   :  { %v922_v30 = vpop.f32.mrf.mxu3 }
 0x22d   :  { %v923_v31 = vadd.f32 %v922_v30, %v883_v28 }
 0x22f   :  { %v926_v32 = vadd.f32 %v925_v29, %v923_v31 }
 0x231   :  { %v928_v33 = vsel %vm927_vm5, %v926_v32, 0.0 }
 0x232   :  { %929 = vadd.xlane.f32.xlu1 %v928_v33  ;;  %v1065_v33 = vperm.slane %v1769_v60, 6 }
 0x234   :  { %v1061_v22 = vpop.f32.mrf.mxu3 }
 0x235   :  { %v1122_v23 = vadd.f32 %v1120_v21, %v1061_v22 }
 0x2a5   :  { %v930_v41 = vpop.xlane.xlu1 %929 }
 0x2a6   :  { %v938_v42 = vmul.f32 %v937_v40, %v930_v41 }
 0x2a8   :  { %v939_v43 = vsub.f32 %v926_v32, %v938_v42 }
 0x2aa   :  { %v940_v44 = vmul.f32 %v939_v43, %v939_v43 }
 0x2ac   :  { %v941_v45 = vsel %vm927_vm5, %v940_v44, 0.0  ;;  %vm1175_vm5 = vcmask 320512  }
 0x2ad   :  { %942 = vadd.xlane.f32.xlu1 %v941_v45 }
 0x2c6   :  { %1124 = vrot.lane.b32.xlu1 %v1122_v23, %s1669_s4 }
 0x320   :  { %v943_v49 = vpop.xlane.xlu1 %942 }
 0x321   :  { %v944_v50 = vmul.f32 %v943_v49, %v937_v40 }
 0x323   :  { %v945_v54 = vadd.f32 1e-05, %v944_v50 }
 0x325   :  { %1489 = vrsqrt.f32 %v945_v54  ;;  %vm952_vm8 = vweird.f32 %v945_v54 }
 0x32b   :  { %v1490_v55 = vpop.eup %1489 }
 0x32c   :  { %v947_v58 = vmul.f32 %v1490_v55, %v945_v54  ;;  %vm953_vm7 = vweird.f32 %v1490_v55 }
 0x32d   :  { %vm954_vm9 = vmor %vm952_vm8, %vm953_vm7 }
 0x32e   :  { %v948_v63 = vmul.f32 %v1490_v55, %v947_v58 }
 0x330   :  { %v949_v1 = vmul.f32 0.5, %v948_v63  ;;  %v1148_v63 = vld [vmem:[#allocation10 + $0x18] sm:$0xff] }
 0x331   :  { %1167 = vmatpush.msrb.mxu0 %v1148_v63 }
 0x332   :  { %v950_v3 = vsub.f32 1.5, %v949_v1 }
 0x333   :  { %1168 = vmatpush.msrb.mxu0 %v1147_v0 }
 0x334   :  { %v951_v4 = vmul.f32 %v1490_v55, %v950_v3 }
 0x335   :  { %1169 = vmatpush.msrb.mxu0 %v1146_v2 }
 0x336   :  { %v955_v6 = vsel %vm954_vm9, %v1490_v55, %v951_v4  ;;  %v1145_v4 = vld [vmem:[#allocation10] sm:$0xff] }
 0x337   :  { %v956_v7 = vmul.f32 %v955_v6, %v939_v43  ;;  %1170 = vmatpush.msrb.mxu0 %v1145_v4 }
 0x338   :  { %v1125_v60 = vpop.permute.xlu1 %1124 }
 0x339   :  { %v958_v9 = vmul.f32 %v957_v5, %v956_v7 }
 0x33b   :  { %v960_v10 = vadd.f32 %v959_v8, %v958_v9 }
 0x33d   :  { %v962_v11 = vmin.f32 %v960_v10, 0.0  ;;  %vm961_vm10 = vcmp.gt.f32.partialorder %v960_v10, 0.0 }
 0x33f   :  { %v963_v12 = vmul.f32 1.442695, %v962_v11 }
 0x341   :  { %1491 = vpow2.f32 %v963_v12 }
 0x347   :  { %v1492_v13 = vpop.eup %1491 }
 0x348   :  { %v1391_v14 = vadd.f32 -1.0, %v1492_v13  ;;  %v1141_v13 = vpop.permute.xlu2 %1140 }
 0x34a   :  { %v966_v15 = vsel %vm961_vm10, %v960_v10, %v1391_v14 }
 0x34b   :  { %1392 = vmatmul.msk.f32.vlgmr.msrb.gmra.mxu1 %vm826_vm0, %v966_v15 }
 0x3c8   :  { %v1000_v26 = vpop.f32.mrf.mxu1 }
 0x3c9   :  { %v1001_v27 = vadd.f32 %v1000_v26, %v967_v25 }
 0x3cb   :  { %v1004_v28 = vmin.f32 %v1001_v27, 0.0  ;;  %vm1003_vm11 = vcmp.gt.f32.partialorder %v1001_v27, 0.0 }
 0x3cd   :  { %v1005_v29 = vmul.f32 1.442695, %v1004_v28 }
 0x3cf   :  { %1493 = vpow2.f32 %v1005_v29 }
 0x3d5   :  { %v1494_v30 = vpop.eup %1493 }
 0x3d6   :  { %v1393_v31 = vadd.f32 -1.0, %v1494_v30 }
 0x3d8   :  { %v1008_v32 = vsel %vm1003_vm11, %v1001_v27, %v1393_v31 }
 0x3d9   :  { %1394 = vmatmul.msk.f32.vlgmr.msrb.gmra.mxu2 %vm826_vm0, %v1008_v32 }
 0x45c   :  { %v1038_v34 = vpop.f32.mrf.mxu2 }
 0x45d   :  { %v1064_v35 = vadd.f32 %v1061_v22, %v1038_v34  ;;  %v1116_v52 = vadd.f32 %v1114_v51, %v1038_v34 }
 0x45f   :  { %v1066_v36 = vadd.f32 %v1065_v33, %v1064_v35  ;;  %v1091_v57 = vadd.f32 %v1089_v56, %v1064_v35 }
 0x461   :  { %v1396_v37 = vmul.f32 -1.442695, %v1066_v36  ;;  %v1397_v58 = vmul.f32 -1.442695, %v1091_v57 }
 0x463   :  { %1495 = vpow2.f32 %v1396_v37 }
 0x469   :  { %v1496_v38 = vpop.eup %1495 }
 0x46a   :  { %v1070_v39 = vadd.f32 1.0, %v1496_v38 }
 0x46c   :  { %1497 = vrcp.f32 %v1070_v39  ;;  %v1082_v43 = vand.u32 2147483648, %v1070_v39  ;;  %v1080_v45 = vand.u32 2147483647, %v1070_v39  ;;  %vm1076_vm13 = vweird.f32 %v1070_v39 }
 0x46e   :  { %v1083_v47 = vor.u32 1.1754944e-38, %v1082_v43  ;;  %vm1081_vm15 = vcmp.eq.f32.partialorder %v1080_v45, 8.507059e+37 }
 0x472   :  { %v1498_v40 = vpop.eup %1497 }
 0x473   :  { %v1072_v41 = vmul.f32 %v1498_v40, %v1070_v39  ;;  %vm1077_vm12 = vweird.f32 %v1498_v40 }
 0x474   :  { %vm1078_vm14 = vmor %vm1076_vm13, %vm1077_vm12 }
 0x475   :  { %v1073_v42 = vsub.f32 1.0, %v1072_v41 }
 0x477   :  { %v1074_v44 = vmul.f32 %v1498_v40, %v1073_v42 }
 0x479   :  { %v1075_v46 = vadd.f32 %v1498_v40, %v1074_v44 }
 0x47b   :  { %v1079_v48 = vsel %vm1078_vm14, %v1498_v40, %v1075_v46 }
 0x47c   :  { %v1084_v49 = vsel %vm1081_vm15, %v1083_v47, %v1079_v48 }
 0x47d   :  { %v1127_v50 = vmul.f32 %v1125_v60, %v1084_v49 }
 0x47f   :  { %1129 = vrot.lane.b32.xlu0 %v1127_v50, %s1669_s4 }
 0x4f1   :  { %v1130_v53 = vpop.permute.xlu0 %1129 }
 0x4f2   :  { %v1132_v54 = vadd.f32 %v1130_v53, %v1116_v52 }
 0x4f4   :  { %1499 = vtanh.f32 %v1132_v54 }
 0x4f5   :  { %1501 = vpow2.f32 %v1397_v58 }
 0x4fa   :  { %v1500_v55 = vpop.eup %1499 }
 0x4fb   :  { %1136 = vrot.lane.b32.xlu0 %v1500_v55, %s1667_s24  ;;  %v1502_v61 = vpop.eup %1501 }
 0x4fc   :  { %v1095_v62 = vadd.f32 1.0, %v1502_v61 }
 0x4fe   :  { %1503 = vrcp.f32 %v1095_v62  ;;  %v1107_v8 = vand.u32 2147483648, %v1095_v62  ;;  %vm1101_vm2 = vweird.f32 %v1095_v62  ;;  %v1105_v9 = vand.u32 2147483647, %v1095_v62 }
 0x500   :  { %v1108_v11 = vor.u32 1.1754944e-38, %v1107_v8  ;;  %vm1106_vm4 = vcmp.eq.f32.partialorder %v1105_v9, 8.507059e+37 }
 0x504   :  { %v1504_v1 = vpop.eup %1503 }
 0x505   :  { %v1097_v3 = vmul.f32 %v1504_v1, %v1095_v62  ;;  %vm1102_vm1 = vweird.f32 %v1504_v1 }
 0x506   :  { %vm1103_vm3 = vmor %vm1101_vm2, %vm1102_vm1 }
 0x507   :  { %v1098_v5 = vsub.f32 1.0, %v1097_v3 }
 0x509   :  { %v1099_v6 = vmul.f32 %v1504_v1, %v1098_v5 }
 0x50b   :  { %v1100_v7 = vadd.f32 %v1504_v1, %v1099_v6 }
 0x50d   :  { %v1104_v10 = vsel %vm1103_vm3, %v1504_v1, %v1100_v7 }
 0x50e   :  { %v1109_v12 = vsel %vm1106_vm4, %v1108_v11, %v1104_v10 }
 0x50f   :  { %v1134_v14 = vsub.f32 1.0, %v1109_v12  ;;  %v1143_v16 = vmul.f32 %v1141_v13, %v1109_v12 }
 0x56d   :  { %v1137_v15 = vpop.permute.xlu0 %1136 }
 0x56e   :  { %v1139_v17 = vmul.f32 %v1137_v15, %v1134_v14 }
 0x570   :  { %v1144_v18 = vadd.f32 %v1143_v16, %v1139_v17 }
 0x572   :  { %1151 = vrot.lane.b32.xlu0 %v1144_v18, %s1667_s24 }
 0x5e4   :  { %v1152_v19 = vpop.permute.xlu0 %1151 }
 0x5e5   :  { %1398 = vmatmul.msk.f32.vlgmr.msrb.gmra.mxu0 %vm826_vm0, %v1152_v19 }
 0x662   :  { %v1172_v21 = vpop.f32.mrf.mxu0 }
 0x663   :  { %v1173_v22 = vadd.f32 %v1172_v21, %v1149_v20 }
 0x665   :  { %1176 = vst.msk [vmem:[%s1845_s9] sm:$0x3] %vm1175_vm5, %v1173_v22 }
 0x666   :  { %1181 = vsyncpa [#allocation3], 1 }
 0x667   :  { %1182 = vsyncpa [#allocation5], 1 }
 0x668   :  { %1183 = vsyncpa [#allocation8], 1 }
 0x669   :  { %1184 = vsyncpa [#allocation11], 1 }

</bundles_post_ra>
